<compile_context>
chip_gen: v7x
topology: tpu7x:2x2x1
jax: 0.10.0
libtpu: 0.0.40
codegen_flags: <defaults>
</compile_context>

<pallas_src>
import jax
import jax.numpy as jnp
import numpy as np
from jax.experimental import pallas as pl
from jax.experimental.pallas import tpu as pltpu

BN_EPS = 1e-5
L2_EPS = 1e-10


def _simnet_kernel(m_ref, img_ref,
                   wc_ref, bc_ref,
                   wt1_ref, bt1_ref, wt2_ref, bt2_ref,
                   wi1_ref, bi1_ref, wi2_ref, bi2_ref,
                   wh1_ref, bh1_ref, wh2_ref, bh2_ref, wh3_ref, bh3_ref,
                   o_ref):
    """One batch tile of the full SimilarityNetwork forward (eval mode).

    bf16 MXU operands, f32 accumulation; all elementwise / normalize / bias
    math in f32 (v5e's VPU has no bf16 path anyway).

    NOTE: every op below is row-wise in the batch dimension, so garbage rows
    of a partial last tile stay contained and are dropped by the wrapper's
    final slice — keep it that way (no cross-row reductions in here).
    """
    f32 = jnp.float32
    bf16 = jnp.bfloat16

    # ConvEncoder (+ mean over L) collapsed to ONE (Bt, 5E) @ (5E, H) matmul:
    # m already holds (row_sum + edge-row corrections) / L, built in the wrapper.
    h_t = jnp.dot(m_ref[...], wc_ref[...], preferred_element_type=f32) + bc_ref[...]

    # Branch: fc1 (eval-mode BatchNorm folded in) -> ReLU -> fc2 -> L2 normalize.
    # (Dropout is identity in eval mode.)
    def branch(h_bf16, w1, b1, w2, b2):
        z = jnp.dot(h_bf16, w1, preferred_element_type=f32) + b1
        z = jnp.maximum(z, 0.0)
        z = jnp.dot(z.astype(bf16), w2, preferred_element_type=f32) + b2
        nrm = jnp.sqrt(jnp.sum(z * z, axis=-1, keepdims=True))
        return z / jnp.maximum(nrm, L2_EPS)          # F.normalize(p=2, eps=1e-10)

    e_t = branch(h_t.astype(bf16), wt1_ref[...], bt1_ref[...],
                 wt2_ref[...], bt2_ref[...])
    e_i = branch(img_ref[...], wi1_ref[...], bi1_ref[...],
                 wi2_ref[...], bi2_ref[...])

    # Similarity head: fc1 -> ReLU -> fc2 -> ReLU -> fc3 -> ReLU.
    d = (e_i * e_t).astype(bf16)
    z = jnp.maximum(jnp.dot(d, wh1_ref[...], preferred_element_type=f32)
                    + bh1_ref[...], 0.0)
    z = jnp.maximum(jnp.dot(z.astype(bf16), wh2_ref[...],
                            preferred_element_type=f32) + bh2_ref[...], 0.0)
    # Final (H/2 -> 1) layer on the VPU/XLU (an N=1 MXU matmul would waste a
    # full push/pop for one useful output lane).
    z3 = jnp.maximum(jnp.sum(z * wh3_ref[...], axis=-1, keepdims=True)
                     + bh3_ref[...], 0.0)                        # (Bt, 1) f32
    # Lane-dense writeback: (Bt, 1) -> (1, Bt) row, batch on lanes.
    row = jnp.transpose(z3, (1, 0))
    o_ref[...] = row[None].astype(o_ref.dtype)                   # (1, 1, Bt)


def fold_params(raw):
    """One-time weight prep (outside the kernel):
      * fold ConvEncoder fc + conv biases + all 9 conv taps into a single
        (5E, H) weight / (1, H) bias (mean-over-L commutes with the linear
        convs; the 4 edge rows correct the zero padding exactly for L >= 2),
      * fold eval-mode BatchNorm into each Branch's fc1,
      * cast all MXU matmul weights to bf16 (biases and the final VPU row
        stay f32).
    The folding itself runs at full f32 precision.
    """
    with jax.default_matmul_precision("highest"):
        H = raw["ce_fc_w"].shape[0]
        Wf = raw["ce_fc_w"]                                        # (H, 3H)
        Wf1, Wf2, Wf3 = Wf[:, :H], Wf[:, H:2 * H], Wf[:, 2 * H:]

        # Per-tap conv weights composed with the matching fc block: (E, H) each.
        w_uni = jnp.einsum("he,gh->eg", raw["conv_uni_w"][:, :, 0], Wf1)
        w_bi = jnp.einsum("hek,gh->keg", raw["conv_bi_w"], Wf2)    # (5, E, H)
        w_tri = jnp.einsum("hek,gh->keg", raw["conv_tri_w"], Wf3)  # (3, E, H)

        # Mean over L of each padded conv equals the full row sum plus
        # corrections involving only rows 0, 1, L-2, L-1 (zero-padding edges).
        w_all = w_uni + w_bi.sum(axis=0) + w_tri.sum(axis=0)
        w_row0 = -(w_bi[3] + w_bi[4] + w_tri[2])     # multiplies x[:, 0]
        w_row1 = -w_bi[4]                            # multiplies x[:, 1]
        w_rowm2 = -w_bi[0]                           # multiplies x[:, L-2]
        w_rowm1 = -(w_bi[0] + w_bi[1] + w_tri[0])    # multiplies x[:, L-1]
        w_conv = jnp.concatenate([w_all, w_row0, w_row1, w_rowm2, w_rowm1],
                                 axis=0)                           # (5E, H)
        b_conv = (raw["conv_uni_b"] @ Wf1.T + raw["conv_bi_b"] @ Wf2.T
                  + raw["conv_tri_b"] @ Wf3.T + raw["ce_fc_b"])[None, :]

        def fold_branch(p):
            scale = p["bn_g"] / jnp.sqrt(p["bn_rv"] + BN_EPS)
            w1 = p["fc1_w"].T * scale[None, :]
            b1 = ((p["fc1_b"] - p["bn_rm"]) * scale + p["bn_b"])[None, :]
            return w1, b1, p["fc2_w"].T, p["fc2_b"][None, :]

        w_t1, b_t1, w_t2, b_t2 = fold_branch(raw["text_branch"])
        w_i1, b_i1, w_i2, b_i2 = fold_branch(raw["image_branch"])

    bf16 = jnp.bfloat16
    # TODO(synk): when H > ~2.5*E it pays to further pre-fold w_conv @ w_t1
    # into one (5E, 2H) weight (dropping the (Bt, H) intermediate); at H ~ E
    # it increases FLOPs, so the fold is intentionally skipped here.
    return dict(
        embedding=raw["embedding"],
        w_conv=w_conv.astype(bf16), b_conv=b_conv,
        w_t1=w_t1.astype(bf16), b_t1=b_t1,
        w_t2=w_t2.astype(bf16), b_t2=b_t2,
        w_i1=w_i1.astype(bf16), b_i1=b_i1,
        w_i2=w_i2.astype(bf16), b_i2=b_i2,
        w_h1=raw["fc1_w"].T.astype(bf16), b_h1=raw["fc1_b"][None, :],
        w_h2=raw["fc2_w"].T.astype(bf16), b_h2=raw["fc2_b"][None, :],
        w_h3=raw["fc3_w"],                    # (1, H//2) f32, used on the VPU
        b_h3=raw["fc3_b"][None, :],           # (1, 1) f32
    )


def similarity_network_forward(input_caption, mask, input_image, kp,
                               b_tile=None):
    """Full forward. input_caption: (B, L) int32, input_image: (B, V) f32.
    Returns (B, 1) f32, matching the PyTorch module (eval mode)."""
    del mask  # accepted but unused, exactly like the PyTorch forward.

    # --- wrapper-side text preprocessing: gather + sequence reduction -------
    # Only the full row sum plus the 4 padding-edge rows are needed by the
    # folded ConvEncoder, so the kernel's text input is just (B, 5E) bf16
    # instead of the (B, L, E) f32 embedding stream.
    # TODO(synk): the nn.Embedding gather + this reduction stay as XLA ops;
    # they could move in-kernel via scalar-prefetched token ids if the table
    # fits VMEM.
    embeds = kp["embedding"][input_caption]                    # (B, L, E) f32
    B, L, E = embeds.shape
    assert L >= 2, "edge-corrected conv reduction needs sequence length >= 2"
    V = input_image.shape[1]

    m = jnp.concatenate(
        [jnp.sum(embeds, axis=1), embeds[:, 0], embeds[:, 1],
         embeds[:, L - 2], embeds[:, L - 1]], axis=-1)         # (B, 5E) f32
    m = (m * (1.0 / L)).astype(jnp.bfloat16)       # fold the mean's 1/L here
    img = input_image.astype(jnp.bfloat16)
    E5 = m.shape[1]

    if b_tile is None:
        # >= 2 grid steps for non-trivial B (keeps both v7x TensorCores busy
        # through the "parallel" batch axis); cap at 256 (v6e/v7x MXU M sweet
        # spot); never exceed the sublane-rounded batch.
        b_tile = min(256, max(8, 8 * pl.cdiv(pl.cdiv(B, 2), 8)))
        b_tile = min(b_tile, 8 * pl.cdiv(B, 8))
    num_tiles = pl.cdiv(B, b_tile)
    grid = (num_tiles,)

    H = kp["w_conv"].shape[1]
    weight_args = (kp["w_conv"], kp["b_conv"],
                   kp["w_t1"], kp["b_t1"], kp["w_t2"], kp["b_t2"],
                   kp["w_i1"], kp["b_i1"], kp["w_i2"], kp["b_i2"],
                   kp["w_h1"], kp["b_h1"], kp["w_h2"], kp["b_h2"],
                   kp["w_h3"], kp["b_h3"])
    # Grid-invariant weight/bias blocks: full array, fixed block index, and
    # single-buffered (no point double-buffering constants).
    w_specs = [pl.BlockSpec(w.shape, lambda b: (0, 0),
                            pipeline_mode=pl.Buffered(1))
               for w in weight_args]

    # VMEM budget from tile arithmetic (not a hard-coded constant): 2x for the
    # double-buffered activation/output tiles + single-buffered weights +
    # headroom for in-kernel f32 intermediates / compiler scratch.  Clamped so
    # it also fits v7x's 64 MiB VMEM.
    weight_bytes = int(sum(int(w.size) * w.dtype.itemsize for w in weight_args))
    in_tile_bytes = b_tile * (E5 * 2 + V * 2)          # bf16 activations/tile
    out_tile_bytes = b_tile * 4                        # f32 output row/tile
    vmem_limit = int(min(max(2 * (in_tile_bytes + out_tile_bytes)
                             + weight_bytes + (8 << 20), 16 << 20), 48 << 20))

    flops = 2 * B * (E5 * H                            # folded conv encoder
                     + H * 2 * H + 2 * H * H           # text branch
                     + V * 2 * H + 2 * H * H           # image branch
                     + H * H + H * (H // 2) + (H // 2))  # similarity head
    bytes_accessed = B * (E5 * 2 + V * 2) + weight_bytes + B * 4

    out = pl.pallas_call(
        _simnet_kernel,
        out_shape=jax.ShapeDtypeStruct((num_tiles, 1, b_tile), jnp.float32),
        grid_spec=pltpu.PrefetchScalarGridSpec(
            num_scalar_prefetch=0,
            grid=grid,
            in_specs=[
                pl.BlockSpec((b_tile, E5), lambda b: (b, 0)),
                pl.BlockSpec((b_tile, V), lambda b: (b, 0)),
            ] + w_specs,
            out_specs=pl.BlockSpec((1, 1, b_tile), lambda b: (b, 0, 0)),
        ),
        compiler_params=pltpu.CompilerParams(
            dimension_semantics=("parallel",),
            vmem_limit_bytes=vmem_limit,
        ),
        cost_estimate=pl.CostEstimate(flops=int(flops),
                                      transcendentals=int(2 * B),
                                      bytes_accessed=int(bytes_accessed)),
    )(m, img, *weight_args)
    # Lane-dense (num_tiles, 1, b_tile) -> (B, 1); padded tail rows dropped.
    return out.reshape(num_tiles * b_tile)[:B][:, None]


def init_raw_params(key, vocab_size, embedding_dim, hidden_dim, visual_dim):
    """Deterministic init mimicking PyTorch defaults (uniform +/- 1/sqrt(fan_in);
    BN params randomized so the eval-mode BatchNorm folding is exercised)."""
    E, H, V = embedding_dim, hidden_dim, visual_dim
    keys = iter(jax.random.split(key, 32))

    def unif(shape, fan_in):
        bound = 1.0 / np.sqrt(fan_in)
        return jax.random.uniform(next(keys), shape, jnp.float32, -bound, bound)

    def nrm(shape, scale=1.0):
        return scale * jax.random.normal(next(keys), shape, jnp.float32)

    def branch(in_dim):
        return dict(
            fc1_w=unif((2 * H, in_dim), in_dim), fc1_b=unif((2 * H,), in_dim),
            fc2_w=unif((H, 2 * H), 2 * H), fc2_b=unif((H,), 2 * H),
            bn_g=1.0 + nrm((2 * H,), 0.1), bn_b=nrm((2 * H,), 0.1),
            bn_rm=nrm((2 * H,), 0.1),
            bn_rv=1.0 + 0.2 * jnp.abs(nrm((2 * H,))),
        )

    return dict(
        embedding=nrm((vocab_size, E), 0.5),
        conv_uni_w=unif((H, E, 1), E * 1), conv_uni_b=unif((H,), E * 1),
        conv_bi_w=unif((H, E, 5), E * 5), conv_bi_b=unif((H,), E * 5),
        conv_tri_w=unif((H, E, 3), E * 3), conv_tri_b=unif((H,), E * 3),
        ce_fc_w=unif((H, 3 * H), 3 * H), ce_fc_b=unif((H,), 3 * H),
        image_branch=branch(V),
        text_branch=branch(H),
        fc1_w=unif((H, H), H), fc1_b=unif((H,), H),
        fc2_w=unif((H // 2, H), H), fc2_b=unif((H // 2,), H),
        fc3_w=unif((1, H // 2), H // 2), fc3_b=unif((1,), H // 2),
    )


def reference_forward(input_caption, mask, input_image, raw):
    """Pure-JAX mirror of the PyTorch forward (eval mode), no folding, f32."""
    del mask
    with jax.default_matmul_precision("highest"):
        embeds = raw["embedding"][input_caption]               # (B, L, E)
        x = jnp.transpose(embeds, (0, 2, 1))                   # (B, E, L)

        def conv1d(xin, w, b, pad):
            y = jax.lax.conv_general_dilated(
                xin, w, window_strides=(1,), padding=[(pad, pad)],
                dimension_numbers=("NCH", "OIH", "NCH"))
            return y + b[None, :, None]

        h_uni = conv1d(x, raw["conv_uni_w"], raw["conv_uni_b"], 0)
        h_bi = conv1d(x, raw["conv_bi_w"], raw["conv_bi_b"], 2)
        h_tri = conv1d(x, raw["conv_tri_w"], raw["conv_tri_b"], 1)
        h = jnp.concatenate([h_uni, h_bi, h_tri], axis=1)      # (B, 3H, L)
        h = jnp.transpose(h, (0, 2, 1))                        # (B, L, 3H)
        h = h @ raw["ce_fc_w"].T + raw["ce_fc_b"]
        h_t = jnp.sum(h, axis=1) / h.shape[1]                  # (B, H)

        def branch(xin, p):
            z = xin @ p["fc1_w"].T + p["fc1_b"]
            z = ((z - p["bn_rm"]) / jnp.sqrt(p["bn_rv"] + BN_EPS)
                 * p["bn_g"] + p["bn_b"])
            z = jnp.maximum(z, 0.0)
            z = z @ p["fc2_w"].T + p["fc2_b"]
            nrm = jnp.sqrt(jnp.sum(z * z, axis=1, keepdims=True))
            return z / jnp.maximum(nrm, L2_EPS)

        e_i = branch(input_image, raw["image_branch"])
        e_t = branch(h_t, raw["text_branch"])
        d = e_i * e_t
        z = jnp.maximum(d @ raw["fc1_w"].T + raw["fc1_b"], 0.0)
        z = jnp.maximum(z @ raw["fc2_w"].T + raw["fc2_b"], 0.0)
        z = jnp.maximum(z @ raw["fc3_w"].T + raw["fc3_b"], 0.0)
        return z


if __name__ == "__main__":
    VOCAB, E, H, V = 50, 32, 32, 64          # embedding / hidden / visual dims
    B, L = 8, 16                             # batch, caption length

    key = jax.random.PRNGKey(0)
    k_cap, k_img, k_p = jax.random.split(key, 3)
    input_caption = jax.random.randint(k_cap, (B, L), 0, VOCAB, jnp.int32)
    mask = jnp.ones((B, L), jnp.float32)     # unused by forward (kept for parity)
    input_image = jax.random.normal(k_img, (B, V), jnp.float32)

    raw = init_raw_params(k_p, VOCAB, E, H, V)
    kernel_params = fold_params(raw)

    out = similarity_network_forward(input_caption, mask, input_image,
                                     kernel_params)
    out = jax.block_until_ready(out)

    ref = reference_forward(input_caption, mask, input_image, raw)
    # Kernel uses bf16 MXU operands with f32 accumulation; the reference is
    # pure f32, so the tolerance reflects bf16 operand rounding only.
    np.testing.assert_allclose(np.asarray(out), np.asarray(ref),
                               rtol=5e-2, atol=3e-2)

    print("KERNEL_OK")
</pallas_src>

<mosaic_0001>
module attributes {stable_mosaic.version = 11 : i64} {
  func.func @_simnet_kernel(%arg0: i32, %arg1: memref<8x160xbf16, #tpu.memory_space<vmem>>, %arg2: memref<8x64xbf16, #tpu.memory_space<vmem>>, %arg3: memref<160x32xbf16, #tpu.memory_space<vmem>>, %arg4: memref<1x32xf32, #tpu.memory_space<vmem>>, %arg5: memref<32x64xbf16, #tpu.memory_space<vmem>>, %arg6: memref<1x64xf32, #tpu.memory_space<vmem>>, %arg7: memref<64x32xbf16, #tpu.memory_space<vmem>>, %arg8: memref<1x32xf32, #tpu.memory_space<vmem>>, %arg9: memref<64x64xbf16, #tpu.memory_space<vmem>>, %arg10: memref<1x64xf32, #tpu.memory_space<vmem>>, %arg11: memref<64x32xbf16, #tpu.memory_space<vmem>>, %arg12: memref<1x32xf32, #tpu.memory_space<vmem>>, %arg13: memref<32x32xbf16, #tpu.memory_space<vmem>>, %arg14: memref<1x32xf32, #tpu.memory_space<vmem>>, %arg15: memref<32x16xbf16, #tpu.memory_space<vmem>>, %arg16: memref<1x16xf32, #tpu.memory_space<vmem>>, %arg17: memref<1x16xf32, #tpu.memory_space<vmem>>, %arg18: memref<1x1xf32, #tpu.memory_space<vmem>>, %arg19: memref<1x1x8xf32, #tpu.memory_space<vmem>>) attributes {dimension_semantics = [#tpu.dimension_semantics<parallel>], iteration_bounds = array<i64: 1>, scalar_prefetch = 0 : i64, scratch_operands = 0 : i64, tpu.core_type = #tpu.core_type<tc>, window_params = [{transform_indices = @transform_0, window_bounds = array<i64: 8, 160>}, {transform_indices = @transform_1, window_bounds = array<i64: 8, 64>}, {pipeline_mode = #tpu.pipeline_mode<synchronous>, transform_indices = @transform_2, window_bounds = array<i64: 160, 32>}, {pipeline_mode = #tpu.pipeline_mode<synchronous>, transform_indices = @transform_3, window_bounds = array<i64: 1, 32>}, {pipeline_mode = #tpu.pipeline_mode<synchronous>, transform_indices = @transform_4, window_bounds = array<i64: 32, 64>}, {pipeline_mode = #tpu.pipeline_mode<synchronous>, transform_indices = @transform_5, window_bounds = array<i64: 1, 64>}, {pipeline_mode = #tpu.pipeline_mode<synchronous>, transform_indices = @transform_6, window_bounds = array<i64: 64, 32>}, {pipeline_mode = #tpu.pipeline_mode<synchronous>, transform_indices = @transform_7, window_bounds = array<i64: 1, 32>}, {pipeline_mode = #tpu.pipeline_mode<synchronous>, transform_indices = @transform_8, window_bounds = array<i64: 64, 64>}, {pipeline_mode = #tpu.pipeline_mode<synchronous>, transform_indices = @transform_9, window_bounds = array<i64: 1, 64>}, {pipeline_mode = #tpu.pipeline_mode<synchronous>, transform_indices = @transform_10, window_bounds = array<i64: 64, 32>}, {pipeline_mode = #tpu.pipeline_mode<synchronous>, transform_indices = @transform_11, window_bounds = array<i64: 1, 32>}, {pipeline_mode = #tpu.pipeline_mode<synchronous>, transform_indices = @transform_12, window_bounds = array<i64: 32, 32>}, {pipeline_mode = #tpu.pipeline_mode<synchronous>, transform_indices = @transform_13, window_bounds = array<i64: 1, 32>}, {pipeline_mode = #tpu.pipeline_mode<synchronous>, transform_indices = @transform_14, window_bounds = array<i64: 32, 16>}, {pipeline_mode = #tpu.pipeline_mode<synchronous>, transform_indices = @transform_15, window_bounds = array<i64: 1, 16>}, {pipeline_mode = #tpu.pipeline_mode<synchronous>, transform_indices = @transform_16, window_bounds = array<i64: 1, 16>}, {pipeline_mode = #tpu.pipeline_mode<synchronous>, transform_indices = @transform_17, window_bounds = array<i64: 1, 1>}, {transform_indices = @transform_18, window_bounds = array<i64: 1, 1, 8>}]} {
    %c0 = arith.constant 0 : index
    %c0_0 = arith.constant 0 : index
    %0 = vector.load %arg1[%c0, %c0_0] : memref<8x160xbf16, #tpu.memory_space<vmem>>, vector<8x160xbf16>
    %c0_1 = arith.constant 0 : index
    %c0_2 = arith.constant 0 : index
    %1 = vector.load %arg3[%c0_1, %c0_2] : memref<160x32xbf16, #tpu.memory_space<vmem>>, vector<160x32xbf16>
    %cst = arith.constant dense<0.000000e+00> : vector<8x32xf32>
    %2 = tpu.matmul %0, %1, %cst {dimension_numbers = #tpu.dot_dimension_numbers<[1], [0], [0], [1], [0, 0, 1, 1], [], []>} : vector<8x160xbf16>, vector<160x32xbf16>, vector<8x32xf32> -> vector<8x32xf32>
    %c0_3 = arith.constant 0 : index
    %c0_4 = arith.constant 0 : index
    %3 = vector.load %arg4[%c0_3, %c0_4] : memref<1x32xf32, #tpu.memory_space<vmem>>, vector<1x32xf32>
    %4 = vector.broadcast %3 : vector<1x32xf32> to vector<8x32xf32>
    %5 = arith.addf %2, %4 : vector<8x32xf32>
    %6 = arith.truncf %5 : vector<8x32xf32> to vector<8x32xbf16>
    %c0_5 = arith.constant 0 : index
    %c0_6 = arith.constant 0 : index
    %7 = vector.load %arg5[%c0_5, %c0_6] : memref<32x64xbf16, #tpu.memory_space<vmem>>, vector<32x64xbf16>
    %c0_7 = arith.constant 0 : index
    %c0_8 = arith.constant 0 : index
    %8 = vector.load %arg6[%c0_7, %c0_8] : memref<1x64xf32, #tpu.memory_space<vmem>>, vector<1x64xf32>
    %c0_9 = arith.constant 0 : index
    %c0_10 = arith.constant 0 : index
    %9 = vector.load %arg7[%c0_9, %c0_10] : memref<64x32xbf16, #tpu.memory_space<vmem>>, vector<64x32xbf16>
    %c0_11 = arith.constant 0 : index
    %c0_12 = arith.constant 0 : index
    %10 = vector.load %arg8[%c0_11, %c0_12] : memref<1x32xf32, #tpu.memory_space<vmem>>, vector<1x32xf32>
    %cst_13 = arith.constant dense<0.000000e+00> : vector<8x64xf32>
    %11 = tpu.matmul %6, %7, %cst_13 {dimension_numbers = #tpu.dot_dimension_numbers<[1], [0], [0], [1], [0, 0, 1, 1], [], []>} : vector<8x32xbf16>, vector<32x64xbf16>, vector<8x64xf32> -> vector<8x64xf32>
    %12 = vector.broadcast %8 : vector<1x64xf32> to vector<8x64xf32>
    %13 = arith.addf %11, %12 : vector<8x64xf32>
    %cst_14 = arith.constant 0.000000e+00 : f32
    %14 = vector.broadcast %cst_14 : f32 to vector<8x64xf32>
    %15 = arith.maximumf %13, %14 : vector<8x64xf32>
    %16 = arith.truncf %15 : vector<8x64xf32> to vector<8x64xbf16>
    %cst_15 = arith.constant dense<0.000000e+00> : vector<8x32xf32>
    %17 = tpu.matmul %16, %9, %cst_15 {dimension_numbers = #tpu.dot_dimension_numbers<[1], [0], [0], [1], [0, 0, 1, 1], [], []>} : vector<8x64xbf16>, vector<64x32xbf16>, vector<8x32xf32> -> vector<8x32xf32>
    %18 = vector.broadcast %10 : vector<1x32xf32> to vector<8x32xf32>
    %19 = arith.addf %17, %18 : vector<8x32xf32>
    %20 = arith.mulf %19, %19 : vector<8x32xf32>
    %cst_16 = arith.constant dense<0.000000e+00> : vector<8xf32>
    %21 = vector.multi_reduction <add>, %20, %cst_16 [1] : vector<8x32xf32> to vector<8xf32>
    %22 = vector.shape_cast %21 : vector<8xf32> to vector<8x1xf32>
    %23 = math.sqrt %22 : vector<8x1xf32>
    %cst_17 = arith.constant 1.000000e-10 : f32
    %24 = vector.broadcast %cst_17 : f32 to vector<8x1xf32>
    %25 = arith.maximumf %23, %24 : vector<8x1xf32>
    %26 = vector.broadcast %25 : vector<8x1xf32> to vector<8x32xf32>
    %27 = arith.divf %19, %26 : vector<8x32xf32>
    %c0_18 = arith.constant 0 : index
    %c0_19 = arith.constant 0 : index
    %28 = vector.load %arg2[%c0_18, %c0_19] : memref<8x64xbf16, #tpu.memory_space<vmem>>, vector<8x64xbf16>
    %c0_20 = arith.constant 0 : index
    %c0_21 = arith.constant 0 : index
    %29 = vector.load %arg9[%c0_20, %c0_21] : memref<64x64xbf16, #tpu.memory_space<vmem>>, vector<64x64xbf16>
    %c0_22 = arith.constant 0 : index
    %c0_23 = arith.constant 0 : index
    %30 = vector.load %arg10[%c0_22, %c0_23] : memref<1x64xf32, #tpu.memory_space<vmem>>, vector<1x64xf32>
    %c0_24 = arith.constant 0 : index
    %c0_25 = arith.constant 0 : index
    %31 = vector.load %arg11[%c0_24, %c0_25] : memref<64x32xbf16, #tpu.memory_space<vmem>>, vector<64x32xbf16>
    %c0_26 = arith.constant 0 : index
    %c0_27 = arith.constant 0 : index
    %32 = vector.load %arg12[%c0_26, %c0_27] : memref<1x32xf32, #tpu.memory_space<vmem>>, vector<1x32xf32>
    %cst_28 = arith.constant dense<0.000000e+00> : vector<8x64xf32>
    %33 = tpu.matmul %28, %29, %cst_28 {dimension_numbers = #tpu.dot_dimension_numbers<[1], [0], [0], [1], [0, 0, 1, 1], [], []>} : vector<8x64xbf16>, vector<64x64xbf16>, vector<8x64xf32> -> vector<8x64xf32>
    %34 = vector.broadcast %30 : vector<1x64xf32> to vector<8x64xf32>
    %35 = arith.addf %33, %34 : vector<8x64xf32>
    %cst_29 = arith.constant 0.000000e+00 : f32
    %36 = vector.broadcast %cst_29 : f32 to vector<8x64xf32>
    %37 = arith.maximumf %35, %36 : vector<8x64xf32>
    %38 = arith.truncf %37 : vector<8x64xf32> to vector<8x64xbf16>
    %cst_30 = arith.constant dense<0.000000e+00> : vector<8x32xf32>
    %39 = tpu.matmul %38, %31, %cst_30 {dimension_numbers = #tpu.dot_dimension_numbers<[1], [0], [0], [1], [0, 0, 1, 1], [], []>} : vector<8x64xbf16>, vector<64x32xbf16>, vector<8x32xf32> -> vector<8x32xf32>
    %40 = vector.broadcast %32 : vector<1x32xf32> to vector<8x32xf32>
    %41 = arith.addf %39, %40 : vector<8x32xf32>
    %42 = arith.mulf %41, %41 : vector<8x32xf32>
    %cst_31 = arith.constant dense<0.000000e+00> : vector<8xf32>
    %43 = vector.multi_reduction <add>, %42, %cst_31 [1] : vector<8x32xf32> to vector<8xf32>
    %44 = vector.shape_cast %43 : vector<8xf32> to vector<8x1xf32>
    %45 = math.sqrt %44 : vector<8x1xf32>
    %cst_32 = arith.constant 1.000000e-10 : f32
    %46 = vector.broadcast %cst_32 : f32 to vector<8x1xf32>
    %47 = arith.maximumf %45, %46 : vector<8x1xf32>
    %48 = vector.broadcast %47 : vector<8x1xf32> to vector<8x32xf32>
    %49 = arith.divf %41, %48 : vector<8x32xf32>
    %50 = arith.mulf %49, %27 : vector<8x32xf32>
    %51 = arith.truncf %50 : vector<8x32xf32> to vector<8x32xbf16>
    %c0_33 = arith.constant 0 : index
    %c0_34 = arith.constant 0 : index
    %52 = vector.load %arg13[%c0_33, %c0_34] : memref<32x32xbf16, #tpu.memory_space<vmem>>, vector<32x32xbf16>
    %cst_35 = arith.constant dense<0.000000e+00> : vector<8x32xf32>
    %53 = tpu.matmul %51, %52, %cst_35 {dimension_numbers = #tpu.dot_dimension_numbers<[1], [0], [0], [1], [0, 0, 1, 1], [], []>} : vector<8x32xbf16>, vector<32x32xbf16>, vector<8x32xf32> -> vector<8x32xf32>
    %c0_36 = arith.constant 0 : index
    %c0_37 = arith.constant 0 : index
    %54 = vector.load %arg14[%c0_36, %c0_37] : memref<1x32xf32, #tpu.memory_space<vmem>>, vector<1x32xf32>
    %55 = vector.broadcast %54 : vector<1x32xf32> to vector<8x32xf32>
    %56 = arith.addf %53, %55 : vector<8x32xf32>
    %cst_38 = arith.constant 0.000000e+00 : f32
    %57 = vector.broadcast %cst_38 : f32 to vector<8x32xf32>
    %58 = arith.maximumf %56, %57 : vector<8x32xf32>
    %59 = arith.truncf %58 : vector<8x32xf32> to vector<8x32xbf16>
    %c0_39 = arith.constant 0 : index
    %c0_40 = arith.constant 0 : index
    %60 = vector.load %arg15[%c0_39, %c0_40] : memref<32x16xbf16, #tpu.memory_space<vmem>>, vector<32x16xbf16>
    %cst_41 = arith.constant dense<0.000000e+00> : vector<8x16xf32>
    %61 = tpu.matmul %59, %60, %cst_41 {dimension_numbers = #tpu.dot_dimension_numbers<[1], [0], [0], [1], [0, 0, 1, 1], [], []>} : vector<8x32xbf16>, vector<32x16xbf16>, vector<8x16xf32> -> vector<8x16xf32>
    %c0_42 = arith.constant 0 : index
    %c0_43 = arith.constant 0 : index
    %62 = vector.load %arg16[%c0_42, %c0_43] : memref<1x16xf32, #tpu.memory_space<vmem>>, vector<1x16xf32>
    %63 = vector.broadcast %62 : vector<1x16xf32> to vector<8x16xf32>
    %64 = arith.addf %61, %63 : vector<8x16xf32>
    %cst_44 = arith.constant 0.000000e+00 : f32
    %65 = vector.broadcast %cst_44 : f32 to vector<8x16xf32>
    %66 = arith.maximumf %64, %65 : vector<8x16xf32>
    %c0_45 = arith.constant 0 : index
    %c0_46 = arith.constant 0 : index
    %67 = vector.load %arg17[%c0_45, %c0_46] : memref<1x16xf32, #tpu.memory_space<vmem>>, vector<1x16xf32>
    %68 = vector.broadcast %67 : vector<1x16xf32> to vector<8x16xf32>
    %69 = arith.mulf %66, %68 : vector<8x16xf32>
    %cst_47 = arith.constant dense<0.000000e+00> : vector<8xf32>
    %70 = vector.multi_reduction <add>, %69, %cst_47 [1] : vector<8x16xf32> to vector<8xf32>
    %71 = vector.shape_cast %70 : vector<8xf32> to vector<8x1xf32>
    %c0_48 = arith.constant 0 : index
    %c0_49 = arith.constant 0 : index
    %72 = vector.load %arg18[%c0_48, %c0_49] : memref<1x1xf32, #tpu.memory_space<vmem>>, vector<1x1xf32>
    %73 = vector.broadcast %72 : vector<1x1xf32> to vector<8x1xf32>
    %74 = arith.addf %71, %73 : vector<8x1xf32>
    %cst_50 = arith.constant 0.000000e+00 : f32
    %75 = vector.broadcast %cst_50 : f32 to vector<8x1xf32>
    %76 = arith.maximumf %74, %75 : vector<8x1xf32>
    %77 = tpu.transpose %76, [1, 0] : vector<8x1xf32> -> vector<1x8xf32>
    %78 = vector.shape_cast %77 : vector<1x8xf32> to vector<1x1x8xf32>
    %c0_51 = arith.constant 0 : index
    %c0_52 = arith.constant 0 : index
    %c0_53 = arith.constant 0 : index
    %79 = vector.load %arg19[%c0_51, %c0_52, %c0_53] : memref<1x1x8xf32, #tpu.memory_space<vmem>>, vector<1x1x8xf32>
    tpu.vector_store %arg19[%c0_51, %c0_52, %c0_53], %78 {strides = array<i32>} : memref<1x1x8xf32, #tpu.memory_space<vmem>>, vector<1x1x8xf32>,
    return
  }
  func.func @transform_0(%arg0: i32) -> (i32, i32) {
    %c0_i32 = arith.constant 0 : i32
    %c0_i32_0 = arith.constant 0 : i32
    return %arg0, %c0_i32 : i32, i32
  }
  func.func @transform_1(%arg0: i32) -> (i32, i32) {
    %c0_i32 = arith.constant 0 : i32
    %c0_i32_0 = arith.constant 0 : i32
    return %arg0, %c0_i32 : i32, i32
  }
  func.func @transform_2(%arg0: i32) -> (i32, i32) {
    %c0_i32 = arith.constant 0 : i32
    %c0_i32_0 = arith.constant 0 : i32
    %c0_i32_1 = arith.constant 0 : i32
    return %c0_i32, %c0_i32_0 : i32, i32
  }
  func.func @transform_3(%arg0: i32) -> (i32, i32) {
    %c0_i32 = arith.constant 0 : i32
    %c0_i32_0 = arith.constant 0 : i32
    %c0_i32_1 = arith.constant 0 : i32
    return %c0_i32, %c0_i32_0 : i32, i32
  }
  func.func @transform_4(%arg0: i32) -> (i32, i32) {
    %c0_i32 = arith.constant 0 : i32
    %c0_i32_0 = arith.constant 0 : i32
    %c0_i32_1 = arith.constant 0 : i32
    return %c0_i32, %c0_i32_0 : i32, i32
  }
  func.func @transform_5(%arg0: i32) -> (i32, i32) {
    %c0_i32 = arith.constant 0 : i32
    %c0_i32_0 = arith.constant 0 : i32
    %c0_i32_1 = arith.constant 0 : i32
    return %c0_i32, %c0_i32_0 : i32, i32
  }
  func.func @transform_6(%arg0: i32) -> (i32, i32) {
    %c0_i32 = arith.constant 0 : i32
    %c0_i32_0 = arith.constant 0 : i32
    %c0_i32_1 = arith.constant 0 : i32
    return %c0_i32, %c0_i32_0 : i32, i32
  }
  func.func @transform_7(%arg0: i32) -> (i32, i32) {
    %c0_i32 = arith.constant 0 : i32
    %c0_i32_0 = arith.constant 0 : i32
    %c0_i32_1 = arith.constant 0 : i32
    return %c0_i32, %c0_i32_0 : i32, i32
  }
  func.func @transform_8(%arg0: i32) -> (i32, i32) {
    %c0_i32 = arith.constant 0 : i32
    %c0_i32_0 = arith.constant 0 : i32
    %c0_i32_1 = arith.constant 0 : i32
    return %c0_i32, %c0_i32_0 : i32, i32
  }
  func.func @transform_9(%arg0: i32) -> (i32, i32) {
    %c0_i32 = arith.constant 0 : i32
    %c0_i32_0 = arith.constant 0 : i32
    %c0_i32_1 = arith.constant 0 : i32
    return %c0_i32, %c0_i32_0 : i32, i32
  }
  func.func @transform_10(%arg0: i32) -> (i32, i32) {
    %c0_i32 = arith.constant 0 : i32
    %c0_i32_0 = arith.constant 0 : i32
    %c0_i32_1 = arith.constant 0 : i32
    return %c0_i32, %c0_i32_0 : i32, i32
  }
  func.func @transform_11(%arg0: i32) -> (i32, i32) {
    %c0_i32 = arith.constant 0 : i32
    %c0_i32_0 = arith.constant 0 : i32
    %c0_i32_1 = arith.constant 0 : i32
    return %c0_i32, %c0_i32_0 : i32, i32
  }
  func.func @transform_12(%arg0: i32) -> (i32, i32) {
    %c0_i32 = arith.constant 0 : i32
    %c0_i32_0 = arith.constant 0 : i32
    %c0_i32_1 = arith.constant 0 : i32
    return %c0_i32, %c0_i32_0 : i32, i32
  }
  func.func @transform_13(%arg0: i32) -> (i32, i32) {
    %c0_i32 = arith.constant 0 : i32
    %c0_i32_0 = arith.constant 0 : i32
    %c0_i32_1 = arith.constant 0 : i32
    return %c0_i32, %c0_i32_0 : i32, i32
  }
  func.func @transform_14(%arg0: i32) -> (i32, i32) {
    %c0_i32 = arith.constant 0 : i32
    %c0_i32_0 = arith.constant 0 : i32
    %c0_i32_1 = arith.constant 0 : i32
    return %c0_i32, %c0_i32_0 : i32, i32
  }
  func.func @transform_15(%arg0: i32) -> (i32, i32) {
    %c0_i32 = arith.constant 0 : i32
    %c0_i32_0 = arith.constant 0 : i32
    %c0_i32_1 = arith.constant 0 : i32
    return %c0_i32, %c0_i32_0 : i32, i32
  }
  func.func @transform_16(%arg0: i32) -> (i32, i32) {
    %c0_i32 = arith.constant 0 : i32
    %c0_i32_0 = arith.constant 0 : i32
    %c0_i32_1 = arith.constant 0 : i32
    return %c0_i32, %c0_i32_0 : i32, i32
  }
  func.func @transform_17(%arg0: i32) -> (i32, i32) {
    %c0_i32 = arith.constant 0 : i32
    %c0_i32_0 = arith.constant 0 : i32
    %c0_i32_1 = arith.constant 0 : i32
    return %c0_i32, %c0_i32_0 : i32, i32
  }
  func.func @transform_18(%arg0: i32) -> (i32, i32, i32) {
    %c0_i32 = arith.constant 0 : i32
    %c0_i32_0 = arith.constant 0 : i32
    %c0_i32_1 = arith.constant 0 : i32
    return %arg0, %c0_i32, %c0_i32_0 : i32, i32, i32
  }
}

</mosaic_0001>

<bundles_post_ra>
// kernel: tpu_custom_call.1
= control target key start
LH: loop header
LB: loop body
LE: loop exit
PB: predicated region body
PF: predicated region fallthrough
CT: control target
= control target key end

     0   :  { %s1217_s0 = inlined_call_operand.vmem [shape: bf16[8,160], index: 0, kind: input, shape index: {}]   ;;  %s1218_s1 = inlined_call_operand.vmem [shape: bf16[8,64], index: 1, kind: input, shape index: {}]   ;;  %s1219_s2 = inlined_call_operand.vmem [shape: bf16[160,32], index: 2, kind: input, shape index: {}]   ;;  %s1220_s3 = inlined_call_operand.vmem [shape: f32[1,32], index: 3, kind: input, shape index: {}]   ;;  %s1221_s4 = inlined_call_operand.vmem [shape: bf16[32,64], index: 4, kind: input, shape index: {}]   ;;  %s1222_s5 = inlined_call_operand.vmem [shape: f32[1,64], index: 5, kind: input, shape index: {}]   ;;  %s1223_s6 = inlined_call_operand.vmem [shape: bf16[64,32], index: 6, kind: input, shape index: {}]   ;;  %s1224_s7 = inlined_call_operand.vmem [shape: f32[1,32], index: 7, kind: input, shape index: {}]   ;;  %s1225_s8 = inlined_call_operand.vmem [shape: bf16[64,64], index: 8, kind: input, shape index: {}]   ;;  %s1226_s9 = inlined_call_operand.vmem [shape: f32[1,64], index: 9, kind: input, shape index: {}]   ;;  %s1227_s10 = inlined_call_operand.vmem [shape: bf16[64,32], index: 10, kind: input, shape index: {}]   ;;  %s1228_s11 = inlined_call_operand.vmem [shape: f32[1,32], index: 11, kind: input, shape index: {}]   ;;  %s1229_s12 = inlined_call_operand.vmem [shape: bf16[32,32], index: 12, kind: input, shape index: {}]   ;;  %s1230_s13 = inlined_call_operand.vmem [shape: f32[1,32], index: 13, kind: input, shape index: {}]   ;;  %s1231_s14 = inlined_call_operand.vmem [shape: bf16[32,16], index: 14, kind: input, shape index: {}]   ;;  %s1232_s15 = inlined_call_operand.vmem [shape: f32[1,16], index: 15, kind: input, shape index: {}]   ;;  %s1233_s16 = inlined_call_operand.vmem [shape: f32[1,16], index: 16, kind: input, shape index: {}]   ;;  %s1234_s17 = inlined_call_operand.<no memory space> [shape: f32[1,1], index: 17, kind: input, shape index: {}]   ;;  %s1235_s18 = inlined_call_operand.hbm [shape: f32[1,1,8], index: 18, kind: output, shape index: {}]  }
   0x1   :  { %1237 = sst [smem:[#allocation6_spill]] %s1217_s0  ;;  %v23_v0 = vstv %s1234_s17 }
   0x2   :  { %1238 = sst [smem:[#allocation7_spill]] %s1218_s1  ;;  %24 = vst [vmem:[#allocation2] sm:$0x1] %v23_v0 }
   0x3   :  { %1239 = sst [smem:[#allocation8_spill]] %s1219_s2 }
   0x4   :  { %s1240_s0 = sld [smem:[#allocation8_spill]]  ;;  %v950_v2 = vmov 0   ;;  %v951_v4 = vmov 0.0   ;;  %s1241_s24 = sld [smem:[#allocation6_spill]]  ;;  %vm157_vm0 = vcmask 261120   ;;  %v900_v9 = vld [vmem:[%s1221_s4] sm:$0xff]  }
   0x5   :  { %161 = vmatprep.subr.bf16.mxu0 %v950_v2  ;;  %824 = vmatprep.subr.bf16.mxu1 %v951_v4 }
   0x6   :  { %825 = vmatpush3.bf16.msra.mxu1 %v900_v9 }
   0x7   :  { %826 = vmatprep.subr.bf16.mxu1 %v951_v4 }
   0xa   :  { %v888_v1 = vld [vmem:[%s1240_s0] sm:$0xff]   ;;  %v889_v3 = vld [vmem:[%s1240_s0 + $0x8] sm:$0xff]   ;;  %v890_v5 = vld [vmem:[%s1240_s0 + $0x10] sm:$0xff]  }
   0xb   :  { %162 = vmatpush1.bf16.msra.mxu0 %v888_v1  ;;  %v891_v6 = vld [vmem:[%s1240_s0 + $0x18] sm:$0xff]   ;;  %v63_v7 = vld [vmem:[%s1241_s24] sm:$0xff]  ;;  %v893_v11 = vld [vmem:[%s1240_s0 + $0x28] sm:$0xff]  }
   0xc   :  { %163 = vmatprep.subr.bf16.mxu0 %v950_v2  ;;  %v756_v8 = vcombine.high %v63_v7, %v63_v7  ;;  %v892_v10 = vld [vmem:[%s1240_s0 + $0x20] sm:$0xff]   ;;  %v894_v12 = vld [vmem:[%s1240_s0 + $0x30] sm:$0xff]  }
   0xe   :  { %767 = vmatprep.mubr.msk.bf16.mxu0 %vm157_vm0, %v756_v8 }
   0xf   :  { %164 = vmatpush1.bf16.msra.mxu0 %v889_v3 }
  0x10   :  { %165 = vmatprep.subr.bf16.mxu0 %v950_v2 }
  0x13   :  { %166 = vmatpush1.bf16.msra.mxu0 %v890_v5 }
  0x14   :  { %167 = vmatprep.subr.bf16.mxu0 %v950_v2 }
  0x17   :  { %168 = vmatpush1.bf16.msra.mxu0 %v891_v6 }
  0x18   :  { %169 = vmatprep.subr.bf16.mxu0 %v950_v2 }
  0x1b   :  { %170 = vmatpush1.bf16.msra.mxu0 %v892_v10 }
  0x1c   :  { %171 = vmatprep.subr.bf16.mxu0 %v950_v2 }
  0x1f   :  { %172 = vmatpush1.bf16.msra.mxu0 %v893_v11 }
  0x20   :  { %173 = vmatprep.subr.bf16.mxu0 %v950_v2 }
  0x21   :  { %25 = vsyncpa [#allocation4], 0  ;;  %v895_v13 = vld [vmem:[%s1240_s0 + $0x38] sm:$0xff]   ;;  %v896_v14 = vld [vmem:[%s1240_s0 + $0x40] sm:$0xff]   ;;  %v755_v16 = vcombine.low %v63_v7, %v63_v7  ;;  %vm952_vm1 = vmmov 0   ;;  %vm309_vm2 = vcmask 523264  }
  0x22   :  { %v897_v15 = vld [vmem:[%s1240_s0 + $0x48] sm:$0xff]   ;;  %828 = vmatprep.mubr.msk.bf16.mxu1 %vm952_vm1, %v951_v4  ;;  %v754_v18 = vld [vmem:[%s1220_s3] ss:$0 sm:$0xff]  ;;  %v904_v27 = vld [vmem:[%s1223_s6 + $0x10] sm:$0xff]   ;;  %s1242_s27 = sld [smem:[#allocation7_spill]]  ;;  %vm693_vm7 = vcmask 130048  }
  0x23   :  { %174 = vmatpush1.bf16.msra.mxu0 %v894_v12  ;;  %v901_v17 = vld [vmem:[%s1221_s4 + $0x8] sm:$0xff]   ;;  %v902_v23 = vld [vmem:[%s1223_s6] sm:$0xff]   ;;  %v905_v28 = vld [vmem:[%s1223_s6 + $0x18] sm:$0xff]   ;;  %vm738_vm8 = vcmask 57344  }
  0x24   :  { %175 = vmatprep.subr.bf16.mxu0 %v950_v2  ;;  %827 = vmatpush3.bf16.msra.mxu1 %v901_v17  ;;  %v903_v26 = vld [vmem:[%s1223_s6 + $0x8] sm:$0xff]   ;;  %v768_v29 = vld [vmem:[%s1222_s5] ss:$0 sm:$0xff]  ;;  %v908_v39 = vld [vmem:[%s1225_s8 + $0x10] sm:$0xff]  }
  0x25   :  { %832 = vmatprep.subr.bf16.mxu1 %v951_v4  ;;  %v906_v36 = vld [vmem:[%s1225_s8] sm:$0xff]   ;;  %v907_v38 = vld [vmem:[%s1225_s8 + $0x8] sm:$0xff]   ;;  %v909_v40 = vld [vmem:[%s1225_s8 + $0x18] sm:$0xff]  }
  0x26   :  { %v910_v42 = vld [vmem:[%s1227_s10] sm:$0xff]   ;;  %v911_v43 = vld [vmem:[%s1227_s10 + $0x8] sm:$0xff]   ;;  %v912_v44 = vld [vmem:[%s1227_s10 + $0x10] sm:$0xff]  }
  0x27   :  { %176 = vmatpush1.bf16.msra.mxu0 %v895_v13  ;;  %v913_v45 = vld [vmem:[%s1227_s10 + $0x18] sm:$0xff]   ;;  %v772_v46 = vld [vmem:[%s1224_s7] ss:$0 sm:$0xff]  ;;  %v915_v8 = vld [vmem:[%s1229_s12 + $0x8] sm:$0xff]  }
  0x28   :  { %177 = vmatprep.subr.bf16.mxu0 %v950_v2  ;;  %v367_v41 = vld [vmem:[%s1242_s27] sm:$0xf] }
  0x29   :  { %v778_v54 = vld [vmem:[%s1226_s9] ss:$0 sm:$0xff] }
  0x2a   :  { %v784_v62 = vld [vmem:[%s1228_s11] ss:$0 sm:$0xff] }
  0x2b   :  { %178 = vmatpush1.bf16.msra.mxu0 %v896_v14  ;;  %v914_v7 = vld [vmem:[%s1229_s12] sm:$0xff]  }
  0x2c   :  { %179 = vmatprep.subr.bf16.mxu0 %v950_v2 }
  0x2f   :  { %180 = vmatpush1.bf16.msra.mxu0 %v897_v15 }
  0x30   :  { %856 = vmatprep.subr.bf16.mxu0 %v951_v4 }
  0x32   :  { %194 = vmatmul.mubr.bf16.vlgmr.msra.gmra.mrb[0].mxu0 %v755_v16 }
  0x33   :  { %864 = vmatprep.mubr.msk.bf16.mxu0 %vm952_vm1, %v951_v4  ;;  %857 = vmatpush3.bf16.msra.mxu0 %v910_v42 }
  0x34   :  { %858 = vmatprep.subr.bf16.mxu0 %v951_v4 }
  0x37   :  { %859 = vmatpush3.bf16.msra.mxu0 %v911_v43  ;;  %v798_v43 = vld [vmem:[%s1233_s16] ss:$0 sm:$0xff] }
  0x38   :  { %860 = vmatprep.subr.bf16.mxu0 %v951_v4 }
  0x3b   :  { %861 = vmatpush3.bf16.msra.mxu0 %v912_v44 }
  0x3c   :  { %862 = vmatprep.subr.bf16.mxu0 %v951_v4 }
  0x3f   :  { %863 = vmatpush3.bf16.msra.mxu0 %v913_v45 }
 0x105   :  { %v195_v19 = vpop.f32.mrb[0].mxu0 }
 0x106   :  { %v196_v20 = vadd.f32 %v754_v18, %v195_v19  ;;  %v197_v21 = vpop.f32.mrb[1].mxu0 }
 0x107   :  { %v198_v22 = vpop.f32.mrb[2].mxu0 }
 0x108   :  { %v201_v24 = vpack.c.bf16 %v196_v20, %v196_v20  ;;  %v199_v25 = vpop.f32.mrb[3].mxu0 }
 0x10a   :  { %829 = vmatmul.mubr.msk.bf16.vlgmr.msra.gmra.mrb[0].mxu1 %vm157_vm0, %v201_v24 }
 0x10b   :  { %833 = vmatpush3.bf16.msra.mxu1 %v902_v23  ;;  %840 = vmatprep.mubr.msk.bf16.mxu1 %vm952_vm1, %v951_v4 }
 0x10c   :  { %834 = vmatprep.subr.bf16.mxu1 %v951_v4 }
 0x10f   :  { %835 = vmatpush3.bf16.msra.mxu1 %v903_v26 }
 0x110   :  { %836 = vmatprep.subr.bf16.mxu1 %v951_v4 }
 0x113   :  { %837 = vmatpush3.bf16.msra.mxu1 %v904_v27 }
 0x114   :  { %838 = vmatprep.subr.bf16.mxu1 %v951_v4 }
 0x117   :  { %839 = vmatpush3.bf16.msra.mxu1 %v905_v28  ;;  %v916_v28 = vld [vmem:[%s1231_s14] sm:$0xff]  }
 0x118   :  { %844 = vmatprep.subr.bf16.mxu1 %v951_v4 }
 0x1dd   :  { %v271_v30 = vpop.f32.mrb[0].mxu1 }
 0x1de   :  { %v272_v31 = vadd.f32 %v768_v29, %v271_v30  ;;  %v830_v32 = vpop.f32.mrb[1].mxu1  ;;  %v917_v30 = vld [vmem:[%s1231_s14 + $0x8] sm:$0xff]  }
 0x1df   :  { %v274_v33 = vpop.f32.mrb[2].mxu1 }
 0x1e0   :  { %v277_v34 = vmax.f32 %v272_v31, 0.0  ;;  %v831_v35 = vpop.f32.mrb[3].mxu1  ;;  %v790_v31 = vld [vmem:[%s1230_s13] ss:$0 sm:$0xff]  ;;  %s953_s13 = smov [#allocation3]  }
 0x1e2   :  { %v278_v37 = vpack.c.bf16 %v277_v34, %v277_v34 }
 0x1e4   :  { %841 = vmatmul.mubr.msk.bf16.vlgmr.msra.gmra.mrb[4].mxu1 %vm309_vm2, %v278_v37 }
 0x1e5   :  { %845 = vmatpush3.bf16.msra.mxu1 %v906_v36  ;;  %852 = vmatprep.mubr.msk.bf16.mxu1 %vm952_vm1, %v951_v4 }
 0x1e6   :  { %846 = vmatprep.subr.bf16.mxu1 %v951_v4 }
 0x1e9   :  { %847 = vmatpush3.bf16.msra.mxu1 %v907_v38 }
 0x1ea   :  { %848 = vmatprep.subr.bf16.mxu1 %v951_v4 }
 0x1ed   :  { %849 = vmatpush3.bf16.msra.mxu1 %v908_v39 }
 0x1ee   :  { %850 = vmatprep.subr.bf16.mxu1 %v951_v4 }
 0x1f1   :  { %851 = vmatpush3.bf16.msra.mxu1 %v909_v40 }
 0x1f2   :  { %868 = vmatprep.subr.bf16.mxu1 %v951_v4 }
 0x1f4   :  { %853 = vmatmul.mubr.msk.bf16.vlgmr.msra.gmra.mrb[8].mxu1 %vm309_vm2, %v367_v41 }
 0x1f5   :  { %872 = vmatprep.mubr.msk.bf16.mxu1 %vm952_vm1, %v951_v4  ;;  %869 = vmatpush3.bf16.msra.mxu1 %v914_v7 }
 0x1f6   :  { %870 = vmatprep.subr.bf16.mxu1 %v951_v4 }
 0x1f9   :  { %871 = vmatpush3.bf16.msra.mxu1 %v915_v8 }
 0x1fa   :  { %876 = vmatprep.subr.bf16.mxu1 %v951_v4 }
 0x2b7   :  { %v347_v47 = vpop.f32.mrb[4].mxu1 }
 0x2b8   :  { %v348_v48 = vadd.f32 %v772_v46, %v347_v47  ;;  %v842_v49 = vpop.f32.mrb[5].mxu1 }
 0x2b9   :  { %v350_v50 = vpop.f32.mrb[6].mxu1 }
 0x2ba   :  { %v843_v51 = vpop.f32.mrb[7].mxu1  ;;  %v353_v52 = vmul.f32 %v348_v48, %v348_v48 }
 0x2bc   :  { %v354_v53 = vsel %vm157_vm0, %v353_v52, 0.0 }
 0x2bd   :  { %355 = vadd.xlane.f32.xlu0 %v354_v53 }
 0x2c7   :  { %v453_v55 = vpop.f32.mrb[8].mxu1 }
 0x2c8   :  { %v454_v56 = vadd.f32 %v778_v54, %v453_v55  ;;  %v854_v57 = vpop.f32.mrb[9].mxu1 }
 0x2c9   :  { %v456_v58 = vpop.f32.mrb[10].mxu1 }
 0x2ca   :  { %v459_v59 = vmax.f32 %v454_v56, 0.0  ;;  %v855_v60 = vpop.f32.mrb[11].mxu1 }
 0x2cc   :  { %v460_v61 = vpack.c.bf16 %v459_v59, %v459_v59 }
 0x2ce   :  { %865 = vmatmul.mubr.msk.bf16.vlgmr.msra.gmra.mrb[4].mxu0 %vm309_vm2, %v460_v61 }
 0x34a   :  { %v356_v9 = vpop.xlane.xlu0 %355 }
 0x34b   :  { %918 = vrsqrt.f32 %v356_v9  ;;  %vm359_vm3 = vcmp.eq.f32.partialorder %v356_v9, inf  ;;  %v362_v14 = vand.u32 2147483648, %v356_v9  ;;  %vm361_vm4 = vcmp.eq.f32.partialorder %v356_v9, 0.0 }
 0x355   :  { %v919_v10 = vpop.eup %918 }
 0x356   :  { %v358_v12 = vmul.f32 %v919_v10, %v356_v9 }
 0x358   :  { %v360_v13 = vsel %vm359_vm3, %v356_v9, %v358_v12 }
 0x359   :  { %v363_v15 = vsel %vm361_vm4, %v362_v14, %v360_v13 }
 0x35a   :  { %v364_v17 = vmax.f32 %v363_v15, 1e-10 }
 0x3a1   :  { %v528_v63 = vpop.f32.mrb[4].mxu0 }
 0x3a2   :  { %v529_v0 = vadd.f32 %v784_v62, %v528_v63  ;;  %v866_v1 = vpop.f32.mrb[5].mxu0 }
 0x3a3   :  { %v531_v2 = vpop.f32.mrb[6].mxu0 }
 0x3a4   :  { %v867_v3 = vpop.f32.mrb[7].mxu0  ;;  %v534_v5 = vmul.f32 %v529_v0, %v529_v0 }
 0x3a6   :  { %v535_v6 = vsel %vm157_vm0, %v534_v5, 0.0 }
 0x3a7   :  { %536 = vadd.xlane.f32.xlu0 %v535_v6 }
 0x434   :  { %v537_v11 = vpop.xlane.xlu0 %536 }
 0x435   :  { %920 = vrsqrt.f32 %v537_v11  ;;  %vm540_vm5 = vcmp.eq.f32.partialorder %v537_v11, inf  ;;  %v543_v19 = vand.u32 2147483648, %v537_v11  ;;  %vm542_vm6 = vcmp.eq.f32.partialorder %v537_v11, 0.0 }
 0x436   :  { %922 = vrcp.f32 %v364_v17 }
 0x43f   :  { %v921_v16 = vpop.eup %920 }
 0x440   :  { %v539_v18 = vmul.f32 %v921_v16, %v537_v11  ;;  %v923_v23 = vpop.eup %922 }
 0x441   :  { %v366_v25 = vmul.f32 %v923_v23, %v348_v48  ;;  %v799_v48 = vld [vmem:[#allocation2] ss:$0 sm:$0xff] }
 0x442   :  { %v541_v20 = vsel %vm540_vm5, %v537_v11, %v539_v18 }
 0x443   :  { %v544_v21 = vsel %vm542_vm6, %v543_v19, %v541_v20 }
 0x444   :  { %v545_v22 = vmax.f32 %v544_v21, 1e-10 }
 0x446   :  { %924 = vrcp.f32 %v545_v22 }
 0x450   :  { %v925_v24 = vpop.eup %924 }
 0x451   :  { %v547_v26 = vmul.f32 %v925_v24, %v529_v0 }
 0x453   :  { %v548_v27 = vmul.f32 %v547_v26, %v366_v25 }
 0x455   :  { %v549_v29 = vpack.c.bf16 %v548_v27, %v548_v27 }
 0x457   :  { %873 = vmatmul.mubr.msk.bf16.vlgmr.msra.gmra.mrb[12].mxu1 %vm157_vm0, %v549_v29 }
 0x458   :  { %877 = vmatpush3.bf16.msra.mxu1 %v916_v28  ;;  %880 = vmatprep.mubr.msk.bf16.mxu1 %vm952_vm1, %v951_v4 }
 0x459   :  { %878 = vmatprep.subr.bf16.mxu1 %v951_v4  ;;  %v794_v4 = vld [vmem:[%s1232_s15] ss:$0 sm:$0xff]  ;;  %s746_s15 = sshll.u32 %s953_s13, 4  ;;  %s747_s15 = int_to_ptr.vmem [resolvable:$true] %s746_s15 }
 0x45a   :  { %s926_s28 = scalar_lea.vmem %s747_s15, 16  ;;  %s930_s16 = scalar_lea.vmem %s747_s15, 32 }
 0x45b   :  { %p927_p0 = scmp.ne.s32.totalorder %s747_s15, %s926_s28  ;;  %p931_p1 = scmp.lt.s32.totalorder %s747_s15, %s747_s15 }
 0x45c   :  { %879 = vmatpush3.bf16.msra.mxu1 %v917_v30  ;;  %p932_p2 = scmp.lt.s32.totalorder %s930_s16, %s926_s28 }
 0x45e   :  { %p933_p3 = por %p932_p2, %p931_p1 }
 0x460   :  { %p934_p4 = pnand %p933_p3, %p927_p0 }
 0x52a   :  { %v610_v32 = vpop.f32.mrb[12].mxu1 }
 0x52b   :  { %v611_v33 = vadd.f32 %v790_v31, %v610_v32  ;;  %v874_v34 = vpop.f32.mrb[13].mxu1 }
 0x52c   :  { %v613_v35 = vpop.f32.mrb[14].mxu1 }
 0x52d   :  { %v616_v36 = vmax.f32 %v611_v33, 0.0  ;;  %v875_v37 = vpop.f32.mrb[15].mxu1 }
 0x52f   :  { %v617_v38 = vpack.c.bf16 %v616_v36, %v616_v36 }
 0x531   :  { %881 = vmatmul.mubr.msk.bf16.vlgmr.msra.gmra.mrb[16].mxu1 %vm157_vm0, %v617_v38 }
 0x604   :  { %v678_v39 = vpop.f32.mrb[16].mxu1 }
 0x605   :  { %v679_v40 = vadd.f32 %v794_v4, %v678_v39  ;;  %v882_v41 = vpop.f32.mrb[17].mxu1 }
 0x606   :  { %v681_v42 = vpop.f32.mrb[18].mxu1 }
 0x607   :  { %v684_v44 = vmax.f32 %v679_v40, 0.0  ;;  %v883_v45 = vpop.f32.mrb[19].mxu1 }
 0x609   :  { %v692_v46 = vmul.f32 %v798_v43, %v684_v44 }
 0x60b   :  { %v694_v47 = vsel %vm693_vm7, %v692_v46, 0.0 }
 0x60c   :  { %695 = vadd.xlane.f32.xlu1 %v694_v47 }
 0x699   :  { %v696_v49 = vpop.xlane.xlu1 %695 }
 0x69a   :  { %v704_v50 = vadd.f32 %v799_v48, %v696_v49 }
 0x69c   :  { %v705_v51 = vmax.f32 %v704_v50, 0.0 }
 0x69e   :  { %706 = vxpose.xlu1.b32.start.end [1/1] (short) (narrow) %v705_v51, 8 }
 0x71e   :  { %v722_v52 = vpop.trf.xlu1 }
 0x71f   :  { %739 = vst.msk [vmem:[#allocation3] sm:$0x1] %vm738_vm8, %v722_v52 }
 0x720   :  { %937 = shalt.err (!%p934_p4)
}
 0x721   :  { %s938_s3 = scalar_lea.hbm %s1235_s18, 16 }
 0x722   :  { %p939_p5 = scmp.ne.s32.totalorder %s1235_s18, %s938_s3  ;;  %p942_p6 = scmp.lt.u32.totalorder %s938_s3, %s1235_s18 }
 0x724   :  { %p944_p7 = pnand %p942_p6, %p939_p5 }
 0x726   :  { %947 = shalt.err (!%p944_p7)
}
 0x727   :  { %749 = dma.vmem_to_hbm [thread:$0]  %s747_s15, 16, %s1235_s18, [#allocation4]  }
 0x728   :  { %948 = dma.done.wait [#allocation4], 16  }
 0x729   :  { %949 = vsyncadd [#allocation4], 4294967280 }
 0x72a   :  { %753 = vsyncpa [#allocation4], 1 }

</bundles_post_ra>
